<compile_context>
chip_gen: v5e
topology: v5e:2x2
jax: 0.10.0
libtpu: 0.0.40
codegen_flags: <defaults>
</compile_context>

<pallas_src>
import functools

import jax
import jax.numpy as jnp
from jax.experimental import pallas as pl
from jax.experimental.pallas import tpu as pltpu


def _cdiv(a, b):
    return -(-a // b)


def _vmem_budgets():
    """Generation-aware (scoped vmem limit, single-pass slab cap, hw tile cap)."""
    try:
        cap = int(pltpu.get_tpu_info().vmem_capacity_bytes)
    except Exception:
        cap = 64 * 1024 * 1024          # conservative fallback (v7x size)
    vmem_limit = cap * 7 // 8           # 56 MiB on v7x, 112 MiB on v5e/v6e
    slab_budget = cap * 3 // 16         # 12 MiB on v7x, 24 MiB on v5e/v6e
    tile_budget = max(cap // 8, 2 * 1024 * 1024)   # keep two-pass tiles >= 2 MiB
    return vmem_limit, slab_budget, tile_budget


def _pick_chunk(HW):
    """Chunk width for the in-kernel streaming reduce of large single-pass slabs."""
    if HW <= 4096:
        return None
    for c in (2048, 1024, 512, 256, 128):
        if HW % c == 0:
            return c
    return None


def _pick_hw_tile(C, HW, itemsize, tile_budget):
    """Largest lane-dense (multiple-of-128) tile within budget -> (hw_tile, hw_pad)."""
    max_lanes = max(128, (tile_budget // max(C * itemsize, 1)) // 128 * 128)
    if HW % 128 == 0 and max_lanes < HW:
        # Prefer an exact divisor (no padding copy) if it is not degenerate.
        lo = max(128, max_lanes // 2)
        t = max_lanes
        while t >= lo:
            if HW % t == 0:
                return t, HW
            t -= 128
    # Balanced tiles + zero padding of the tail (minimizes padded traffic).
    n_tiles = max(_cdiv(HW, max_lanes), 1)
    hw_tile = _cdiv(_cdiv(HW, n_tiles), 128) * 128
    return hw_tile, n_tiles * hw_tile


def _channel_attention(avg, mx, w1, w2):
    """avg, mx: (C, 1) f32 pooled vectors -> (C, 1) f32 sigmoid attention."""
    C = avg.shape[0]
    # Fuse avg/max MLP passes into one width-2 matmul: p[:,0]=avg, p[:,1]=max.
    col = jax.lax.broadcasted_iota(jnp.int32, (C, 2), 1)
    p = jnp.where(col == 0, avg, mx)                                       # (C, 2)
    h = jnp.maximum(jnp.dot(w1, p, preferred_element_type=jnp.float32), 0.0)
    o = jnp.dot(w2, h, preferred_element_type=jnp.float32)                 # (C, 2)
    return jax.nn.sigmoid(jnp.sum(o, axis=-1, keepdims=True))              # (C, 1)


# ------------------------------ single-pass kernel --------------------------

def _cbam_fused_kernel(x_ref, w1_ref, w2_ref, o_ref, *, chunk):
    # x_ref: (1, C, HW) lane-dense block for one batch element, native dtype.
    C, HW = x_ref.shape[1], x_ref.shape[2]
    inv_hw = 1.0 / HW

    if chunk is None:
        x = x_ref[0]                                                       # (C, HW)
        s = jnp.sum(x, axis=-1, keepdims=True, dtype=jnp.float32)
        m = jnp.max(x, axis=-1, keepdims=True).astype(jnp.float32)
    else:
        n_chunks = HW // chunk

        def body(i, carry):
            s, m = carry
            start = pl.multiple_of(i * chunk, chunk)
            xc = x_ref[0, :, pl.ds(start, chunk)]                          # (C, chunk)
            s = s + jnp.sum(xc, axis=-1, keepdims=True, dtype=jnp.float32)
            m = jnp.maximum(m, jnp.max(xc, axis=-1, keepdims=True).astype(jnp.float32))
            return s, m

        s, m = jax.lax.fori_loop(
            0, n_chunks, body,
            (jnp.zeros((C, 1), jnp.float32),
             jnp.full((C, 1), -jnp.inf, jnp.float32)))

    attn = _channel_attention(s * inv_hw, m,
                              w1_ref[...].astype(jnp.float32),
                              w2_ref[...].astype(jnp.float32))             # (C, 1) f32

    if chunk is None:
        o_ref[0] = (x.astype(jnp.float32) * attn).astype(o_ref.dtype)
    else:
        @pl.loop(0, HW // chunk)
        def _(i):
            start = pl.multiple_of(i * chunk, chunk)
            xc = x_ref[0, :, pl.ds(start, chunk)].astype(jnp.float32)
            o_ref[0, :, pl.ds(start, chunk)] = (xc * attn).astype(o_ref.dtype)


# ------------------- fused two-pass (tiled HW, single call) ------------------

def _cbam_twopass_kernel(x_ref, w1_ref, w2_ref, o_ref,
                         sum_sc, max_sc, attn_sc, *, num_tiles, hw_true):
    # grid = (N, 2*num_tiles): t < num_tiles reduces, t >= num_tiles scales.
    t = pl.program_id(1)
    hw_tile = x_ref.shape[2]
    padded = num_tiles * hw_tile != hw_true
    inv_hw = 1.0 / hw_true

    @pl.when(t == 0)
    def _():
        sum_sc[...] = jnp.zeros_like(sum_sc)
        max_sc[...] = jnp.full_like(max_sc, -jnp.inf)

    @pl.when(t < num_tiles)
    def _reduce():
        x = x_ref[0]                                                       # (C, hw_tile)
        sum_sc[...] += jnp.sum(x, axis=-1, keepdims=True, dtype=jnp.float32)
        xm = x.astype(jnp.float32)
        if padded:   # mask zero-padded tail lanes out of the running max
            lane = t * hw_tile + jax.lax.broadcasted_iota(jnp.int32, xm.shape, 1)
            xm = jnp.where(lane < hw_true, xm, -jnp.inf)
        max_sc[...] = jnp.maximum(max_sc[...], jnp.max(xm, axis=-1, keepdims=True))

        @pl.when(t == num_tiles - 1)
        def _():
            attn_sc[...] = _channel_attention(
                sum_sc[...] * inv_hw, max_sc[...],
                w1_ref[...].astype(jnp.float32),
                w2_ref[...].astype(jnp.float32))

    @pl.when(t >= num_tiles)
    def _scale():
        o_ref[0] = (x_ref[0].astype(jnp.float32) * attn_sc[...]).astype(o_ref.dtype)


# ------------- unfused two-pass (N == 1: fully-parallel scale grid) ----------

def _cbam_attn_kernel(x_ref, w1_ref, w2_ref, attn_ref, sum_sc, max_sc, *,
                      num_tiles, hw_true):
    t = pl.program_id(1)
    hw_tile = x_ref.shape[2]
    padded = num_tiles * hw_tile != hw_true

    @pl.when(t == 0)
    def _():
        sum_sc[...] = jnp.zeros_like(sum_sc)
        max_sc[...] = jnp.full_like(max_sc, -jnp.inf)

    x = x_ref[0]                                                           # (C, hw_tile)
    sum_sc[...] += jnp.sum(x, axis=-1, keepdims=True, dtype=jnp.float32)
    xm = x.astype(jnp.float32)
    if padded:
        lane = t * hw_tile + jax.lax.broadcasted_iota(jnp.int32, xm.shape, 1)
        xm = jnp.where(lane < hw_true, xm, -jnp.inf)
    max_sc[...] = jnp.maximum(max_sc[...], jnp.max(xm, axis=-1, keepdims=True))

    @pl.when(t == num_tiles - 1)
    def _():
        attn_ref[0] = _channel_attention(
            sum_sc[...] * (1.0 / hw_true), max_sc[...],
            w1_ref[...].astype(jnp.float32),
            w2_ref[...].astype(jnp.float32))


def _cbam_scale_kernel(x_ref, attn_ref, o_ref):
    o_ref[0] = (x_ref[0].astype(jnp.float32) * attn_ref[0]).astype(o_ref.dtype)


# ---------------------------------- wrapper ----------------------------------

def cbam_block_forward(x, w_fc1, w_fc2, *, hw_tile=None):
    """x: (N, C, H, W); w_fc1: (Cmid, C); w_fc2: (C, Cmid)."""
    N, C, H, W = x.shape
    HW = H * W
    Cmid = w_fc1.shape[0]
    itemsize = jnp.dtype(x.dtype).itemsize
    vmem_limit, slab_budget, tile_budget = _vmem_budgets()

    # Lane-dense layout: flatten spatial dims in the wrapper, not the kernel.
    xf = x.reshape(N, C, HW)

    # ---- choose single-pass (2x HBM traffic) vs tiled two-pass (3x) ----------
    if hw_tile is None:
        if C * HW * itemsize <= slab_budget:
            hw_tile, hw_pad = HW, HW
        else:
            hw_tile, hw_pad = _pick_hw_tile(C, HW, itemsize, tile_budget)
    else:
        if hw_tile >= HW:
            hw_tile, hw_pad = HW, HW
        else:
            assert hw_tile % 128 == 0, "forced hw_tile must be a multiple of 128"
            hw_pad = _cdiv(HW, hw_tile) * hw_tile

    if hw_tile == HW:
        # ---------------- single pass: one (C, HW) slab per batch element -----
        chunk = _pick_chunk(HW)
        out = pl.pallas_call(
            functools.partial(_cbam_fused_kernel, chunk=chunk),
            out_shape=jax.ShapeDtypeStruct((N, C, HW), x.dtype),
            grid_spec=pltpu.PrefetchScalarGridSpec(
                num_scalar_prefetch=0,
                grid=(N,),
                in_specs=[
                    pl.BlockSpec((1, C, HW), lambda n: (n, 0, 0)),
                    pl.BlockSpec((Cmid, C), lambda n: (0, 0)),
                    pl.BlockSpec((C, Cmid), lambda n: (0, 0)),
                ],
                out_specs=pl.BlockSpec((1, C, HW), lambda n: (n, 0, 0)),
            ),
            compiler_params=pltpu.CompilerParams(
                dimension_semantics=("parallel",),
                vmem_limit_bytes=vmem_limit,
            ),
            cost_estimate=pl.CostEstimate(
                flops=3 * N * C * HW + 8 * N * C * Cmid,
                transcendentals=N * C,
                bytes_accessed=2 * N * C * HW * itemsize,
            ),
        )(xf, w_fc1, w_fc2)
        return out.reshape(N, C, H, W)

    # -------------------------- tiled two-pass over HW ------------------------
    T = hw_pad // hw_tile
    if hw_pad != HW:
        xf = jnp.pad(xf, ((0, 0), (0, 0), (0, hw_pad - HW)))   # zeros: sum-neutral

    if N >= 2:
        # Fused (N, 2T) grid: reduce phase then scale phase. x is read twice
        # (unavoidable), attention never round-trips HBM, one launch.
        out = pl.pallas_call(
            functools.partial(_cbam_twopass_kernel, num_tiles=T, hw_true=HW),
            out_shape=jax.ShapeDtypeStruct((N, C, hw_pad), x.dtype),
            grid_spec=pltpu.PrefetchScalarGridSpec(
                num_scalar_prefetch=0,
                grid=(N, 2 * T),
                in_specs=[
                    pl.BlockSpec((1, C, hw_tile), lambda n, t: (n, 0, t % T)),
                    pl.BlockSpec((Cmid, C), lambda n, t: (0, 0)),
                    pl.BlockSpec((C, Cmid), lambda n, t: (0, 0)),
                ],
                # During the reduce phase the output index stays at block 0 (no
                # premature writeback); the scale phase writes blocks 0..T-1.
                out_specs=pl.BlockSpec(
                    (1, C, hw_tile), lambda n, t: (n, 0, jnp.maximum(t - T, 0))),
                scratch_shapes=[
                    pltpu.VMEM((C, 1), jnp.float32),   # running sum
                    pltpu.VMEM((C, 1), jnp.float32),   # running max
                    pltpu.VMEM((C, 1), jnp.float32),   # attention
                ],
            ),
            compiler_params=pltpu.CompilerParams(
                dimension_semantics=("parallel", "arbitrary"),
                vmem_limit_bytes=vmem_limit,
            ),
            cost_estimate=pl.CostEstimate(
                flops=3 * N * C * hw_pad + 8 * N * C * Cmid,
                transcendentals=N * C,
                bytes_accessed=3 * N * C * hw_pad * itemsize,
            ),
        )(xf, w_fc1, w_fc2)
    else:
        # N == 1: keep the scale pass as a separate fully-parallel (N, T) grid
        # so both v7x TensorCores get tiles to stream.
        attn = pl.pallas_call(
            functools.partial(_cbam_attn_kernel, num_tiles=T, hw_true=HW),
            out_shape=jax.ShapeDtypeStruct((N, C, 1), jnp.float32),
            grid_spec=pltpu.PrefetchScalarGridSpec(
                num_scalar_prefetch=0,
                grid=(N, T),
                in_specs=[
                    pl.BlockSpec((1, C, hw_tile), lambda n, t: (n, 0, t)),
                    pl.BlockSpec((Cmid, C), lambda n, t: (0, 0)),
                    pl.BlockSpec((C, Cmid), lambda n, t: (0, 0)),
                ],
                out_specs=pl.BlockSpec((1, C, 1), lambda n, t: (n, 0, 0)),
                scratch_shapes=[
                    pltpu.VMEM((C, 1), jnp.float32),
                    pltpu.VMEM((C, 1), jnp.float32),
                ],
            ),
            compiler_params=pltpu.CompilerParams(
                dimension_semantics=("parallel", "arbitrary"),
                vmem_limit_bytes=vmem_limit,
            ),
        )(xf, w_fc1, w_fc2)

        out = pl.pallas_call(
            _cbam_scale_kernel,
            out_shape=jax.ShapeDtypeStruct((N, C, hw_pad), x.dtype),
            grid_spec=pltpu.PrefetchScalarGridSpec(
                num_scalar_prefetch=0,
                grid=(N, T),
                in_specs=[
                    pl.BlockSpec((1, C, hw_tile), lambda n, t: (n, 0, t)),
                    pl.BlockSpec((1, C, 1), lambda n, t: (n, 0, 0)),
                ],
                out_specs=pl.BlockSpec((1, C, hw_tile), lambda n, t: (n, 0, t)),
            ),
            compiler_params=pltpu.CompilerParams(
                dimension_semantics=("parallel", "parallel"),
                vmem_limit_bytes=vmem_limit,
            ),
        )(xf, attn)

    if hw_pad != HW:
        out = out[:, :, :HW]
    return out.reshape(N, C, H, W)


def _reference(x, w1, w2):
    # Pure-JAX reference matching the PyTorch semantics.
    avg = jnp.mean(x, axis=(2, 3))                            # (N, C)
    mx = jnp.max(x, axis=(2, 3))                              # (N, C)

    def mlp(p):                                               # p: (N, C)
        h = jnp.maximum(p @ w1.T, 0.0)                        # (N, Cmid)
        return h @ w2.T                                       # (N, C)

    attn = jax.nn.sigmoid(mlp(avg) + mlp(mx))                 # (N, C)
    return attn[:, :, None, None] * x


if __name__ == "__main__":
    key = jax.random.PRNGKey(0)
    kx, k1, k2, kx2, kx3 = jax.random.split(key, 5)

    def check(out, x, w1, w2, tag):
        ref = _reference(x, w1, w2)
        assert out.shape == x.shape, tag
        assert jnp.allclose(out, ref, atol=1e-5, rtol=1e-5), tag

    # 1) Module config cbam_block(channel=4, ratio=1): single-pass path.
    N, C, H, W = 2, 4, 16, 16
    Cmid = C // 1
    x = jax.random.normal(kx, (N, C, H, W), dtype=jnp.float32)
    w_fc1 = 0.1 * jax.random.normal(k1, (Cmid, C), dtype=jnp.float32)
    w_fc2 = 0.1 * jax.random.normal(k2, (C, Cmid), dtype=jnp.float32)
    out = jax.block_until_ready(cbam_block_forward(x, w_fc1, w_fc2))
    check(out, x, w_fc1, w_fc2, "single-pass")

    # 2) Single-pass with the chunked in-kernel streaming reduce (HW > 4096).
    w1b = 0.1 * jax.random.normal(k1, (8, 8), dtype=jnp.float32)
    w2b = 0.1 * jax.random.normal(k2, (8, 8), dtype=jnp.float32)
    x1 = jax.random.normal(kx3, (1, 8, 64, 128), dtype=jnp.float32)
    out1 = jax.block_until_ready(cbam_block_forward(x1, w1b, w2b))
    check(out1, x1, w1b, w2b, "single-pass-chunked")

    # 3) Fused two-pass (forced tiling, N >= 2).
    x2 = jax.random.normal(kx2, (2, 8, 16, 32), dtype=jnp.float32)
    out2 = jax.block_until_ready(cbam_block_forward(x2, w1b, w2b, hw_tile=128))
    check(out2, x2, w1b, w2b, "two-pass-fused")

    # 4) N == 1 unfused two-pass (fully-parallel scale grid).
    out3 = jax.block_until_ready(cbam_block_forward(x2[:1], w1b, w2b, hw_tile=128))
    check(out3, x2[:1], w1b, w2b, "two-pass-unfused")

    # 5) Non-128-multiple HW (zero-padded tail, masked running max).
    x4 = jax.random.normal(kx, (2, 8, 10, 20), dtype=jnp.float32)
    out4 = jax.block_until_ready(cbam_block_forward(x4, w1b, w2b, hw_tile=128))
    check(out4, x4, w1b, w2b, "two-pass-padded")

    print("KERNEL_OK")
</pallas_src>

<mosaic_0001>
module attributes {stable_mosaic.version = 11 : i64} {
  func.func @_cbam_fused_kernel(%arg0: i32, %arg1: memref<1x4x256xf32, #tpu.memory_space<vmem>>, %arg2: memref<4x4xf32, #tpu.memory_space<vmem>>, %arg3: memref<4x4xf32, #tpu.memory_space<vmem>>, %arg4: memref<1x4x256xf32, #tpu.memory_space<vmem>>) attributes {dimension_semantics = [#tpu.dimension_semantics<parallel>], iteration_bounds = array<i64: 2>, scalar_prefetch = 0 : i64, scratch_operands = 0 : i64, tpu.core_type = #tpu.core_type<tc>, window_params = [{transform_indices = @transform_0, window_bounds = array<i64: 1, 4, 256>}, {pipeline_mode = #tpu.pipeline_mode<synchronous>, transform_indices = @transform_1, window_bounds = array<i64: 4, 4>}, {pipeline_mode = #tpu.pipeline_mode<synchronous>, transform_indices = @transform_2, window_bounds = array<i64: 4, 4>}, {transform_indices = @transform_3, window_bounds = array<i64: 1, 4, 256>}]} {
    %c0 = arith.constant 0 : index
    %c0_0 = arith.constant 0 : index
    %c0_1 = arith.constant 0 : index
    %0 = vector.load %arg1[%c0, %c0_0, %c0_1] : memref<1x4x256xf32, #tpu.memory_space<vmem>>, vector<1x4x256xf32>
    %1 = vector.shape_cast %0 : vector<1x4x256xf32> to vector<4x256xf32>
    %cst = arith.constant dense<0.000000e+00> : vector<4xf32>
    %2 = vector.multi_reduction <add>, %1, %cst [1] : vector<4x256xf32> to vector<4xf32>
    %3 = vector.shape_cast %2 : vector<4xf32> to vector<4x1xf32>
    %cst_2 = arith.constant dense<0xFF800000> : vector<4xf32>
    %4 = vector.multi_reduction <maximumf>, %1, %cst_2 [1] : vector<4x256xf32> to vector<4xf32>
    %5 = vector.shape_cast %4 : vector<4xf32> to vector<4x1xf32>
    %cst_3 = arith.constant 3.906250e-03 : f32
    %6 = vector.broadcast %cst_3 : f32 to vector<4x1xf32>
    %7 = arith.mulf %3, %6 : vector<4x1xf32>
    %c0_4 = arith.constant 0 : index
    %c0_5 = arith.constant 0 : index
    %8 = vector.load %arg2[%c0_4, %c0_5] : memref<4x4xf32, #tpu.memory_space<vmem>>, vector<4x4xf32>
    %c0_6 = arith.constant 0 : index
    %c0_7 = arith.constant 0 : index
    %9 = vector.load %arg3[%c0_6, %c0_7] : memref<4x4xf32, #tpu.memory_space<vmem>>, vector<4x4xf32>
    %10 = tpu.iota {dimensions = array<i32: 1>} : vector<4x2xi32>
    %c0_i32 = arith.constant 0 : i32
    %11 = vector.broadcast %c0_i32 : i32 to vector<4x2xi32>
    %12 = arith.cmpi eq, %10, %11 : vector<4x2xi32>
    %13 = vector.shape_cast %7 : vector<4x1xf32> to vector<4x1xf32>
    %14 = vector.broadcast %13 : vector<4x1xf32> to vector<4x2xf32>
    %15 = vector.shape_cast %5 : vector<4x1xf32> to vector<4x1xf32>
    %16 = vector.broadcast %15 : vector<4x1xf32> to vector<4x2xf32>
    %17 = arith.select %12, %14, %16 : vector<4x2xi1>, vector<4x2xf32>
    %cst_8 = arith.constant dense<0.000000e+00> : vector<4x2xf32>
    %18 = tpu.matmul %8, %17, %cst_8 {dimension_numbers = #tpu.dot_dimension_numbers<[1], [0], [0], [1], [0, 0, 1, 1], [], []>} : vector<4x4xf32>, vector<4x2xf32>, vector<4x2xf32> -> vector<4x2xf32>
    %cst_9 = arith.constant 0.000000e+00 : f32
    %19 = vector.broadcast %cst_9 : f32 to vector<4x2xf32>
    %20 = arith.maximumf %18, %19 : vector<4x2xf32>
    %cst_10 = arith.constant dense<0.000000e+00> : vector<4x2xf32>
    %21 = tpu.matmul %9, %20, %cst_10 {dimension_numbers = #tpu.dot_dimension_numbers<[1], [0], [0], [1], [0, 0, 1, 1], [], []>} : vector<4x4xf32>, vector<4x2xf32>, vector<4x2xf32> -> vector<4x2xf32>
    %cst_11 = arith.constant dense<0.000000e+00> : vector<4xf32>
    %22 = vector.multi_reduction <add>, %21, %cst_11 [1] : vector<4x2xf32> to vector<4xf32>
    %23 = vector.shape_cast %22 : vector<4xf32> to vector<4x1xf32>
    %24 = arith.negf %23 : vector<4x1xf32>
    %25 = math.exp %24 : vector<4x1xf32>
    %cst_12 = arith.constant 1.000000e+00 : f32
    %26 = vector.broadcast %cst_12 : f32 to vector<4x1xf32>
    %27 = arith.addf %26, %25 : vector<4x1xf32>
    %28 = arith.divf %26, %27 : vector<4x1xf32>
    %29 = vector.broadcast %28 : vector<4x1xf32> to vector<4x256xf32>
    %30 = arith.mulf %1, %29 : vector<4x256xf32>
    %c0_13 = arith.constant 0 : index
    %c0_14 = arith.constant 0 : index
    %c0_15 = arith.constant 0 : index
    %31 = vector.load %arg4[%c0_13, %c0_14, %c0_15] : memref<1x4x256xf32, #tpu.memory_space<vmem>>, vector<1x4x256xf32>
    %32 = vector.shape_cast %31 : vector<1x4x256xf32> to vector<4x256xf32>
    %33 = vector.shape_cast %30 : vector<4x256xf32> to vector<1x4x256xf32>
    tpu.vector_store %arg4[%c0_13, %c0_14, %c0_15], %33 {strides = array<i32>} : memref<1x4x256xf32, #tpu.memory_space<vmem>>, vector<1x4x256xf32>,
    return
  }
  func.func @transform_0(%arg0: i32) -> (i32, i32, i32) {
    %c0_i32 = arith.constant 0 : i32
    %c0_i32_0 = arith.constant 0 : i32
    %c0_i32_1 = arith.constant 0 : i32
    return %arg0, %c0_i32, %c0_i32_0 : i32, i32, i32
  }
  func.func @transform_1(%arg0: i32) -> (i32, i32) {
    %c0_i32 = arith.constant 0 : i32
    %c0_i32_0 = arith.constant 0 : i32
    %c0_i32_1 = arith.constant 0 : i32
    return %c0_i32, %c0_i32_0 : i32, i32
  }
  func.func @transform_2(%arg0: i32) -> (i32, i32) {
    %c0_i32 = arith.constant 0 : i32
    %c0_i32_0 = arith.constant 0 : i32
    %c0_i32_1 = arith.constant 0 : i32
    return %c0_i32, %c0_i32_0 : i32, i32
  }
  func.func @transform_3(%arg0: i32) -> (i32, i32, i32) {
    %c0_i32 = arith.constant 0 : i32
    %c0_i32_0 = arith.constant 0 : i32
    %c0_i32_1 = arith.constant 0 : i32
    return %arg0, %c0_i32, %c0_i32_0 : i32, i32, i32
  }
}

</mosaic_0001>

<bundles_post_ra>
// kernel: tpu_custom_call.1
= control target key start
LH: loop header
LB: loop body
LE: loop exit
PB: predicated region body
PF: predicated region fallthrough
CT: control target
= control target key end

     0   :  { %8 = vsyncpa [#allocation3], 0  ;;  %s877_s0 = inlined_call_operand.hbm [shape: f32[2,4,256], index: 0, kind: input, shape index: {}]   ;;  %s878_s1 = inlined_call_operand.hbm [shape: f32[4,4], index: 1, kind: input, shape index: {}]   ;;  %s879_s2 = inlined_call_operand.hbm [shape: f32[4,4], index: 2, kind: input, shape index: {}]   ;;  %s880_s3 = inlined_call_operand.hbm [shape: f32[2,4,256], index: 3, kind: output, shape index: {}]  }
   0x1   :  { %10 = vsyncpa [#allocation3 + $0x1], 0 }
   0x2   :  { %11 = vsyncpa [#allocation6], 0 }
   0x3   :  { %12 = vsyncpa [#allocation4], 0 }
   0x4   :  { %14 = vsyncpa [#allocation4 + $0x1], 0  ;;  %s721_s12 = smov 0   ;;  %s723_s13 = smov 0  }
   0x5   :  { %s725_s14 = smov 0   ;;  %s727_s15 = smov 0  }
   0x6 LB: > { %s742_s16 = sadd.s32 4294967295, %s696_s15   ;;  %s439_s17 = sadd.s32 4294967294, %s696_s15   ;;  %s696_s15 = sphi %s727_s15, %s890_s15   ;;  %s692_s14 = sphi %s725_s14, %s889_s14   ;;  %s688_s13 = sphi %s723_s13, %s888_s13   ;;  %s684_s12 = sphi %s721_s12, %s887_s12  }
   0x7   : > { %p40_p0 = scmp.ne.s32.totalorder %s688_s13, %s684_s12  ;;  %p41_p1 = scmp.eq.s32.totalorder %s742_s16, 0 }
   0x8   : > { %p106_p2 = scmp.eq.s32.totalorder %s742_s16, 1  ;;  %p112_p3 = scmp.eq.s32.totalorder %s439_s17, 1 }
   0x9   : > { %p751_p4 = por %p41_p1, %p40_p0  ;;  %p440_p5 = scmp.ge.s32.totalorder %s696_s15, 1 }
   0xa   : > { %p756_p6 = por %p112_p3, %p40_p0  ;;  %p119_p7 = scmp.lt.s32.totalorder %s696_s15, 3 }
   0xb   : > { %s131_s22 = sshll.u32 %s878_s1, 4  ;;  %s698_s24 = smov [#allocation5]   ;;  %s132_s22 = int_to_ptr.hbm [resolvable:$true] %s131_s22 }
   0xc   : > { %p764_p8 = pnand %p440_p5, %p119_p7  ;;  %s133_s25 = sshll.u32 %s698_s24, 4  ;;  %s134_s25 = int_to_ptr.vmem [resolvable:$true] %s133_s25 }
   0xd   : > { %s143_s28 = sshll.u32 %s879_s2, 4  ;;  %s699_s29 = smov [#allocation7]   ;;  %s144_s28 = int_to_ptr.hbm [resolvable:$true] %s143_s28 }
   0xe   : > { %p476_p10 = pneg %p764_p8  ;;  %s145_s30 = sshll.u32 %s699_s29, 4  ;;  %s146_s30 = int_to_ptr.vmem [resolvable:$true] %s145_s30 }
   0xf   : > { %s777_s4 = sadd.s32 1, %s696_s15   ;;  %s27_s5 = sadd.s32 1, %s692_s14 }
  0x10   : > { %p477_p11 = pnand %p476_p10, %p41_p1  ;;  %s24_s6 = ssub.s32 %s696_s15, %s777_s4 }
  0x11   : > { %p34_p12 = scmp.ne.s32.totalorder %s692_s14, %s688_s13  ;;  %p25_p13 = scmp.eq.s32.totalorder %s24_s6, 0 }
  0x12   : > { %479 = dma.hbm_to_vmem [thread:$0]  (!%p477_p11), %s132_s22, 64, %s134_s25, [#allocation6]  }
  0x13   : > { %482 = dma.hbm_to_vmem [thread:$0]  (!%p477_p11), %s144_s28, 64, %s146_s30, [#allocation6]  }
  0x14   : > { %p35_p0 = scmp.eq.s32.totalorder %s696_s15, 0  ;;  %p787_p3 = por %p106_p2, %p34_p12 }
  0x15   : > { %p493_p5 = scmp.lt.s32.totalorder %s696_s15, 2  ;;  %s156_s9 = sand.u32 1, %s692_s14  }
  0x16   : > { %s793_s8 = scalar_select %p25_p13, %s692_s14, %s27_s5  }
  0x17   : > { %p36_p7 = por %p35_p0, %p34_p12  ;;  %s444_s10 = sshll.u32 %s156_s9, 3 }
  0x18   : > { %s462_s11 = sshll.u32 %s696_s15, 3  ;;  %s160_s22 = scalar_lea.vmem [#allocation2], %s444_s10 }
  0x19   : > { %s165_s21 = scalar_lea.hbm %s877_s0, %s462_s11  ;;  %s169_s24 = sshll.u32 %s160_s22, 4  ;;  %s170_s24 = int_to_ptr.vmem [resolvable:$true] %s169_s24 }
  0x1a   : > { %s167_s25 = sshll.u32 %s165_s21, 4  ;;  %p800_p2 = pnand %p493_p5, %p36_p7  ;;  %s168_s25 = int_to_ptr.hbm [resolvable:$true] %s167_s25 }
  0x1b   : > { %s157_s27 = scalar_lea.sflag [#allocation3], %s156_s9  ;;  %s596_s28 = sshra.s32 %s168_s25, 4  ;;  %s597_s28 = int_to_ptr.hbm [resolvable:$true] %s596_s28 }
  0x1c   : > { %s598_s29 = scalar_lea.hbm %s597_s28, 8  ;;  %p600_p11 = pneg %p800_p2 }
  0x1d   : > { %p599_p10 = scmp.ne.s32.totalorder %s597_s28, %s598_s29  ;;  %s603_s6 = scalar_lea.hbm %s877_s0, 16 }
  0x1e   : > { %p604_p0 = scmp.lt.s32.totalorder %s597_s28, %s877_s0  ;;  %p605_p5 = scmp.lt.s32.totalorder %s603_s6, %s598_s29 }
  0x1f   : > { %p601_p12 = pnand %p600_p11, %p599_p10 }
  0x20   : > { %p606_p7 = por %p605_p5, %p604_p0 }
  0x21   : > { %p602_p13 = pneg %p601_p12 }
  0x23   : > { %p607_p9 = pnand %p606_p7, %p602_p13 }
  0x25   : > { %610 = shalt.err (!%p607_p9)
}
  0x26   : > { %486 = dma.hbm_to_vmem [thread:$0]  (!%p800_p2), %s168_s25, 128, %s170_s24, %s157_s27  }
  0x27   : > { %178 = sbr.rel (%p764_p8) target bundleno = 592 (0x250), region = 32  ;;  %s817_s9 = sand.u32 (!%p764_p8), 1, %s688_s13  }
  0x28   : > { %s448_s17 = sshll.u32 (!%p764_p8), %s817_s9, 3  ;;  %s181_s20 = scalar_lea.sflag (!%p764_p8), [#allocation3], %s817_s9 }
  0x29   : > { %s184_s21 = scalar_lea.vmem (!%p764_p8), [#allocation2], %s448_s17 }
  0x2c   : > { %671 = dma.done.wait (%p751_p4), %s181_s20, 128  }
  0x2d   : > { %673 = vsyncadd (%p751_p4), %s181_s20, 4294967168 }
  0x2e   : > { %675 = dma.done.wait (%p41_p1), [#allocation6], 128  }
  0x2f   : > { %677 = vsyncadd (%p41_p1), [#allocation6], 4294967168  ;;  %v831_v0 = vld [vmem:[%s184_s21] sm:$0xff]  ;;  %vm225_vm0 = vcmask 1043456   ;;  %v244_v11 = vlaneseq  ;;  %v242_v16 = vld [vmem:[#allocation5] sm:$0xf] }
  0x30   : > { %220 = vst [vmem:[#allocation1] ss:$2 sm:$0xff] %v831_v0  ;;  %vm248_vm2 = vcmask 31744   ;;  %v243_v20 = vld [vmem:[#allocation7] sm:$0xf]  ;;  %vm302_vm3 = vcmask 11264  }
  0x31   : > { %v245_v13 = vand.u32 127, %v244_v11  ;;  %v700_v30 = vmov 839922192   ;;  %s463_s18 = sshll.u32 %s742_s16, 3  ;;  %s217_s25 = scalar_lea.vmem [#allocation8], %s448_s17 }
  0x32   : > { %v327_v31 = vunpack.c.l.s4 %v700_v30  ;;  %s345_s24 = scalar_lea.hbm %s880_s3, %s463_s18  ;;  %s347_s16 = sshll.u32 %s217_s25, 4  ;;  %s348_s16 = int_to_ptr.vmem [resolvable:$true] %s347_s16 }
  0x33   : > { %vm246_vm1 = vcmp.eq.s32.totalorder %v245_v13, 0  ;;  %s349_s26 = sshll.u32 %s345_s24, 4  ;;  %s334_s27 = scalar_lea.sflag [#allocation4], %s817_s9  ;;  %s350_s26 = int_to_ptr.hbm [resolvable:$true] %s349_s26 }
  0x34   : > { %v328_v36 = vunpack.c.0.s8 %v327_v31  ;;  %s640_s28 = sshra.s32 %s350_s26, 4  ;;  %s646_s6 = scalar_lea.hbm %s880_s3, 16  ;;  %s641_s28 = int_to_ptr.hbm [resolvable:$true] %s640_s28 }
  0x35   : > { %s642_s29 = scalar_lea.hbm %s641_s28, 8  ;;  %p647_p9 = scmp.lt.s32.totalorder %s641_s28, %s880_s3 }
  0x36   : > { %p643_p1 = scmp.ne.s32.totalorder %s641_s28, %s642_s29  ;;  %p648_p2 = scmp.lt.s32.totalorder %s646_s6, %s642_s29 }
  0x37   : > { %v221_v1 = vld.sshfl [vmem:[#allocation1] sm:$0xff pattern:$0x75316420]  ;;  %v222_v2 = vld.sshfl [vmem:[#allocation1 + $0x8] sm:$0xff pattern:$0x75316420] }
  0x38   : > { %v226_v3 = vsel %vm225_vm0, %v221_v1, 0.0  ;;  %v227_v4 = vsel %vm225_vm0, %v222_v2, 0.0  ;;  %231 = vst [vmem:[#allocation1] ss:$2 sm:$0xff] %v831_v0  ;;  %p644_p4 = pnand %p643_p1, %p787_p3  ;;  %p649_p10 = por %p648_p2, %p647_p9 }
  0x39   : > { %v228_v5 = vadd.f32 %v227_v4, %v226_v3 }
  0x3a   : > { %p645_p8 = pneg %p644_p4 }
  0x3b   : > { %229 = vadd.xlane.f32.xlu0 %v228_v5 }
  0x3c   : > { %p650_p11 = pnand %p649_p10, %p645_p8 }
  0x3f   : > { %v232_v6 = vld.sshfl [vmem:[#allocation1] sm:$0xff pattern:$0x75316420]  ;;  %v233_v7 = vld.sshfl [vmem:[#allocation1 + $0x8] sm:$0xff pattern:$0x75316420] }
  0x40   : > { %v236_v8 = vsel %vm225_vm0, %v232_v6, -inf  ;;  %v237_v9 = vsel %vm225_vm0, %v233_v7, -inf }
  0x41   : > { %v238_v10 = vmax.f32 %v236_v8, %v237_v9 }
  0x43   : > { %239 = vmax.xlane.f32.xlu0 %v238_v10 }
  0xae   : > { %v230_v12 = vpop.xlane.xlu0 %229 }
  0xaf   : > { %v241_v14 = vmul.f32 0.00390625, %v230_v12 }
  0xb6   : > { %v240_v15 = vpop.xlane.xlu0 %239 }
  0xb7   : > { %v247_v17 = vsel %vm246_vm1, %v241_v14, %v240_v15 }
  0xb8   : > { %452 = vmatpush.msk.msra.mxu0 %vm225_vm0, %v247_v17 }
  0xb9   : > { %453 = vmatmul.msk.f32.vlgmr.msra.gmra.mxu0 %vm248_vm2, %v242_v16 }
 0x136   : > { %v272_v18 = vpop.f32.mrf.mxu0 }
 0x137   : > { %v275_v19 = vmax.f32 %v272_v18, 0.0 }
 0x139   : > { %454 = vmatpush.msk.msra.mxu1 %vm225_vm0, %v275_v19 }
 0x13a   : > { %455 = vmatmul.msk.f32.vlgmr.msra.gmra.mxu1 %vm248_vm2, %v243_v20 }
 0x1b7   : > { %v299_v21 = vpop.f32.mrf.mxu1 }
 0x1b8   : > { %v303_v22 = vsel %vm302_vm3, %v299_v21, 0.0 }
 0x1b9   : > { %304 = vadd.xlane.f32.xlu1 %v303_v22 }
 0x22c   : > { %v305_v23 = vpop.xlane.xlu1 %304 }
 0x22d   : > { %v456_v24 = vmul.f32 -1.442695, %v305_v23 }
 0x22f   : > { %532 = vpow2.f32 %v456_v24 }
 0x235   : > { %v533_v25 = vpop.eup %532 }
 0x236   : > { %v309_v26 = vadd.f32 1.0, %v533_v25 }
 0x238   : > { %534 = vrcp.f32 %v309_v26  ;;  %v321_v32 = vand.u32 2147483648, %v309_v26  ;;  %v319_v34 = vand.u32 2147483647, %v309_v26  ;;  %vm315_vm5 = vweird.f32 %v309_v26 }
 0x23a   : > { %v322_v37 = vor.u32 1.1754944e-38, %v321_v32  ;;  %vm320_vm7 = vcmp.eq.f32.partialorder %v319_v34, 8.507059e+37 }
 0x23e   : > { %v535_v27 = vpop.eup %534 }
 0x23f   : > { %v311_v28 = vmul.f32 %v535_v27, %v309_v26  ;;  %vm316_vm4 = vweird.f32 %v535_v27 }
 0x240   : > { %vm317_vm6 = vmor %vm315_vm5, %vm316_vm4 }
 0x241   : > { %v312_v29 = vsub.f32 1.0, %v311_v28 }
 0x243   : > { %v313_v33 = vmul.f32 %v535_v27, %v312_v29 }
 0x245   : > { %v314_v35 = vadd.f32 %v535_v27, %v313_v33 }
 0x247   : > { %v318_v38 = vsel %vm317_vm6, %v535_v27, %v314_v35 }
 0x248   : > { %v323_v39 = vsel %vm320_vm7, %v322_v37, %v318_v38 }
 0x249   : > { %v329_v40 = vperm.slane %v323_v39, %v328_v36 }
 0x24b   : > { %v331_v41 = vmul.f32 %v329_v40, %v831_v0 }
 0x24d   : > { %332 = vst [vmem:[%s217_s25] sm:$0xff] %v331_v41 }
 0x24e   : > { %653 = shalt.err (!%p650_p11)
}
 0x24f   : > { %474 = dma.vmem_to_hbm [thread:$0]  (%p787_p3), %s348_s16, 128, %s350_s26, %s334_s27  }
 0x250 PF: > { %s361_s9 = sand.u32 1, %s684_s12   ;;  %p886_p12 = scmp.ge.s32.totalorder %s696_s15, 2 }
 0x251   : > { %s362_s17 = scalar_lea.sflag [#allocation4], %s361_s9 }
 0x252   : > { %p488_p13 = pnand %p886_p12, %p756_p6 }
 0x254   : > { %p489_p0 = pneg %p488_p13 }
 0x256   : > { %679 = dma.done.wait (%p489_p0), %s362_s17, 128  }
 0x257   : > { %681 = vsyncadd (%p489_p0), %s362_s17, 4294967168  ;;  %p17_p5 = scmp.ge.s32.totalorder %s777_s4, 4   ;;  %s887_s12 = smov %s688_s13 }
 0x258   : > { %s888_s13 = smov %s692_s14  ;;  %s889_s14 = smov %s793_s8 }
 0x259   : > { %s890_s15 = smov %s777_s4  ;;  %19 = sbr.rel (!%p17_p5) target bundleno = 6 (0x6), region = 85 }
 0x25e   :  { %368 = vsyncpa [#allocation3], 1 }
 0x25f   :  { %370 = vsyncpa [#allocation3 + $0x1], 1 }
 0x260   :  { %371 = vsyncpa [#allocation6], 1 }
 0x261   :  { %372 = vsyncpa [#allocation4], 1 }
 0x262   :  { %374 = vsyncpa [#allocation4 + $0x1], 1 }

</bundles_post_ra>
